<compile_context>
chip_gen: v6e
topology: v6e:2x2x1
jax: 0.10.0
libtpu: 0.0.40
codegen_flags: <defaults>
</compile_context>

<pallas_src>
import functools

import jax
import jax.numpy as jnp
from jax.experimental import pallas as pl
from jax.experimental.pallas import tpu as pltpu


def _round_up(x, m):
    return ((x + m - 1) // m) * m


# Biggest batch tile we allow; comfortably inside scoped VMEM on every generation
# even on the f32-epilogue (v5e) path (~6 MiB peak at TB=1024).
_MAX_TB = 1024


def _device_kind():
    try:
        return jax.devices()[0].device_kind.lower()
    except Exception:
        return ""


def _mlp_fused_kernel(x_ref, w1_ref, w2_ref, w3_ref, w4_ref, shifts_ref, o_ref,
                      *, bf16_epilogue):
    """Whole 4-layer MLP on one batch tile (weights resident, activations in VMEM)."""
    neg = 0.01  # LeakyReLU negative slope

    def hidden_layer(h_bf16, w_ref, shift_row):
        n = w_ref.shape[1]
        # bf16 x bf16 -> f32 accumulation on the MXU.
        y = jnp.dot(h_bf16, w_ref[...], preferred_element_type=jnp.float32)
        if bf16_epilogue:
            # v6e/v7x: bf16-native VALU -> do shift + LeakyReLU packed in bf16.
            y = y.astype(jnp.bfloat16)
            if shift_row is not None:
                y = y + shifts_ref[shift_row:shift_row + 1, 0:n].astype(jnp.bfloat16)
            y = jnp.maximum(y, neg * y)
            return y                      # already bf16 for the next matmul
        else:
            # v5e: no bf16 VALU -> keep the epilogue in f32.
            if shift_row is not None:
                y = y + shifts_ref[shift_row:shift_row + 1, 0:n]
            y = jnp.maximum(y, neg * y)
            return y.astype(jnp.bfloat16)

    # Layer 1: shift already folded into w1 via the constant-1 input column.
    h = hidden_layer(x_ref[...], w1_ref, None)
    h = hidden_layer(h, w2_ref, 0)
    h = hidden_layer(h, w3_ref, 1)

    # Final Linear: no BN, no activation; epilogue kept in f32 for accuracy.
    y = jnp.dot(h, w4_ref[...], preferred_element_type=jnp.float32)
    y = y + shifts_ref[2:3, 0:w4_ref.shape[1]]
    o_ref[...] = y.astype(o_ref.dtype)


def init_params(key, input_size, num_classes):
    """Deterministic synthetic params mirroring the PyTorch module shapes."""
    dims = [input_size, 512, 256, 128, num_classes]
    params = []
    for li in range(4):
        fan_in, fan_out = dims[li], dims[li + 1]
        key, kw, kb, kg, kbe, km, kv = jax.random.split(key, 7)
        bound = 1.0 / jnp.sqrt(fan_in)
        w = jax.random.uniform(kw, (fan_in, fan_out), jnp.float32, -bound, bound)
        b = jax.random.uniform(kb, (fan_out,), jnp.float32, -bound, bound)
        layer = {"w": w, "b": b}
        if li < 3:  # first three Linear layers are followed by BatchNorm1d
            layer["gamma"] = 1.0 + 0.1 * jax.random.normal(kg, (fan_out,), jnp.float32)
            layer["beta"] = 0.1 * jax.random.normal(kbe, (fan_out,), jnp.float32)
            layer["running_mean"] = 0.1 * jax.random.normal(km, (fan_out,), jnp.float32)
            layer["running_var"] = jax.random.uniform(kv, (fan_out,), jnp.float32, 0.5, 1.5)
        params.append(layer)
    return params


def prepare_fused_params(params, num_classes, eps=1e-5):
    """One-time offline fold: BN scale into weights, bias+BN shift packed, bf16 cast.

    Layer 1's shift is folded as an extra weight row (consumed by a constant-1 column
    appended to x).  Layer 4 is padded to 128 output lanes (lane-dense final store).
    """
    n_pad = _round_up(num_classes, 128)
    ws, shifts = [], []
    for li, layer in enumerate(params):
        w, b = layer["w"], layer["b"]
        if "gamma" in layer:
            scale = layer["gamma"] / jnp.sqrt(layer["running_var"] + eps)
            shift = layer["beta"] + (b - layer["running_mean"]) * scale
            w_f = w * scale[None, :]
        else:
            shift = b
            w_f = w
        if li == 0:
            # Fold the layer-1 shift into the matmul: extra row, consumed by the
            # constant-1 column appended to x in the wrapper.
            w_f = jnp.concatenate([w_f, shift[None, :]], axis=0)
            shift = None
        if li == 3:
            w_f = jnp.pad(w_f, ((0, 0), (0, n_pad - w_f.shape[1])))
            shift = jnp.pad(shift, (0, n_pad - shift.shape[0]))
        ws.append(w_f.astype(jnp.bfloat16))
        if shift is not None:
            shifts.append(shift)

    shift_w = max(max(s.shape[0] for s in shifts), 128)
    packed_shifts = jnp.stack(
        [jnp.pad(s, (0, shift_w - s.shape[0])) for s in shifts], axis=0
    ).astype(jnp.float32)                    # (3, 256) f32 -> one tiny DMA
    return tuple(ws) + (packed_shifts,), n_pad


def mlp_forward(fused, x, num_classes, out_dtype=jnp.float32):
    w1, w2, w3, w4, shifts = fused
    B = x.shape[0]
    k_aug = w1.shape[0]                      # input_size + 1 (constant-1 column)
    n_pad = w4.shape[1]

    kind = _device_kind()
    is_v7 = "v7" in kind
    # v5e (and older) VPUs have no bf16 ALUs -> keep the epilogue in f32 there.
    bf16_epilogue = not any(t in kind for t in ("v2", "v3", "v4", "v5"))

    # Constant-1 column folds the layer-1 shift into the matmul.
    x_aug = jnp.concatenate([x, jnp.ones((B, 1), x.dtype)], axis=1)

    # Balanced batch tiling: minimal padding (<16 rows), tiles are multiples of 16
    # (bf16 sublane pack).  On v7x ensure >=2 tiles so both TensorCores get work.
    num_tiles = pl.cdiv(B, _MAX_TB)
    if is_v7 and B > 16:
        num_tiles = max(num_tiles, 2)
    tb = _round_up(pl.cdiv(B, num_tiles), 16)
    b_pad = tb * num_tiles
    if b_pad != B:
        x_aug = jnp.pad(x_aug, ((0, b_pad - B), (0, 0)))
    x_bf = x_aug.astype(jnp.bfloat16)

    if is_v7 and num_tiles >= 2:
        dim_sem = (pltpu.CORE_PARALLEL,)     # shard batch tiles across the 2 TCs
    else:
        dim_sem = (pltpu.PARALLEL,)

    kernel = functools.partial(_mlp_fused_kernel, bf16_epilogue=bf16_epilogue)

    out = pl.pallas_call(
        kernel,
        out_shape=jax.ShapeDtypeStruct((b_pad, n_pad), jnp.bfloat16),
        grid=(num_tiles,),
        in_specs=[
            pl.BlockSpec((tb, k_aug), lambda i: (i, 0)),      # activations: tiled over batch
            pl.BlockSpec(w1.shape, lambda i: (0, 0)),         # weights: resident in VMEM
            pl.BlockSpec(w2.shape, lambda i: (0, 0)),
            pl.BlockSpec(w3.shape, lambda i: (0, 0)),
            pl.BlockSpec(w4.shape, lambda i: (0, 0)),
            pl.BlockSpec(shifts.shape, lambda i: (0, 0)),     # packed shifts: one small DMA
        ],
        out_specs=pl.BlockSpec((tb, n_pad), lambda i: (i, 0)),
        compiler_params=pltpu.CompilerParams(dimension_semantics=dim_sem),
    )(x_bf, w1, w2, w3, w4, shifts)

    return out[:B, :num_classes].astype(out_dtype)


def mlp_reference(params, x):
    """Plain-JAX f32 reference for sanity checking."""
    h = x
    for li, layer in enumerate(params):
        y = h @ layer["w"] + layer["b"]
        if "gamma" in layer:
            y = (y - layer["running_mean"]) / jnp.sqrt(layer["running_var"] + 1e-5)
            y = y * layer["gamma"] + layer["beta"]
        if li < 3:
            y = jnp.where(y > 0, y, 0.01 * y)
        h = y
    return h


if __name__ == "__main__":
    input_size = 32
    num_classes = 8
    batch = 8

    key = jax.random.PRNGKey(0)
    kp, kx = jax.random.split(key)
    params = init_params(kp, input_size, num_classes)
    x = jax.random.normal(kx, (batch, input_size), jnp.float32)

    fused, _ = prepare_fused_params(params, num_classes)
    out = jax.block_until_ready(mlp_forward(fused, x, num_classes))
    ref = jax.block_until_ready(mlp_reference(params, x))

    assert out.shape == (batch, num_classes), out.shape
    # bf16 MXU inputs / bf16 epilogue+output (f32 accumulation) vs f32 reference.
    assert jnp.allclose(out, ref, atol=5e-2, rtol=5e-2), \
        f"max abs err {jnp.max(jnp.abs(out - ref))}"
    print("KERNEL_OK")
</pallas_src>

<mosaic_0001>
module attributes {stable_mosaic.version = 11 : i64} {
  func.func @_mlp_fused_kernel(%arg0: i32, %arg1: memref<16x33xbf16, #tpu.memory_space<vmem>>, %arg2: memref<33x512xbf16, #tpu.memory_space<vmem>>, %arg3: memref<512x256xbf16, #tpu.memory_space<vmem>>, %arg4: memref<256x128xbf16, #tpu.memory_space<vmem>>, %arg5: memref<128x128xbf16, #tpu.memory_space<vmem>>, %arg6: memref<3x256xf32, #tpu.memory_space<vmem>>, %arg7: memref<16x128xbf16, #tpu.memory_space<vmem>>) attributes {dimension_semantics = [#tpu.dimension_semantics<parallel>], iteration_bounds = array<i64: 1>, scalar_prefetch = 0 : i64, scratch_operands = 0 : i64, tpu.core_type = #tpu.core_type<tc>, window_params = [{transform_indices = @transform_0, window_bounds = array<i64: 16, 33>}, {pipeline_mode = #tpu.pipeline_mode<synchronous>, transform_indices = @transform_1, window_bounds = array<i64: 33, 512>}, {pipeline_mode = #tpu.pipeline_mode<synchronous>, transform_indices = @transform_2, window_bounds = array<i64: 512, 256>}, {pipeline_mode = #tpu.pipeline_mode<synchronous>, transform_indices = @transform_3, window_bounds = array<i64: 256, 128>}, {pipeline_mode = #tpu.pipeline_mode<synchronous>, transform_indices = @transform_4, window_bounds = array<i64: 128, 128>}, {pipeline_mode = #tpu.pipeline_mode<synchronous>, transform_indices = @transform_5, window_bounds = array<i64: 3, 256>}, {transform_indices = @transform_6, window_bounds = array<i64: 16, 128>}]} {
    %c0 = arith.constant 0 : index
    %c0_0 = arith.constant 0 : index
    %0 = vector.load %arg1[%c0, %c0_0] : memref<16x33xbf16, #tpu.memory_space<vmem>>, vector<16x33xbf16>
    %c0_1 = arith.constant 0 : index
    %c0_2 = arith.constant 0 : index
    %1 = vector.load %arg2[%c0_1, %c0_2] : memref<33x512xbf16, #tpu.memory_space<vmem>>, vector<33x512xbf16>
    %cst = arith.constant dense<0.000000e+00> : vector<16x512xf32>
    %2 = tpu.matmul %0, %1, %cst {dimension_numbers = #tpu.dot_dimension_numbers<[1], [0], [0], [1], [0, 0, 1, 1], [], []>} : vector<16x33xbf16>, vector<33x512xbf16>, vector<16x512xf32> -> vector<16x512xf32>
    %3 = arith.truncf %2 : vector<16x512xf32> to vector<16x512xbf16>
    %cst_3 = arith.constant 1.000980e-02 : bf16
    %4 = vector.broadcast %cst_3 : bf16 to vector<16x512xbf16>
    %5 = arith.mulf %4, %3 : vector<16x512xbf16>
    %6 = arith.maximumf %3, %5 : vector<16x512xbf16>
    %c0_4 = arith.constant 0 : index
    %c0_5 = arith.constant 0 : index
    %7 = vector.load %arg3[%c0_4, %c0_5] : memref<512x256xbf16, #tpu.memory_space<vmem>>, vector<512x256xbf16>
    %cst_6 = arith.constant dense<0.000000e+00> : vector<16x256xf32>
    %8 = tpu.matmul %6, %7, %cst_6 {dimension_numbers = #tpu.dot_dimension_numbers<[1], [0], [0], [1], [0, 0, 1, 1], [], []>} : vector<16x512xbf16>, vector<512x256xbf16>, vector<16x256xf32> -> vector<16x256xf32>
    %9 = arith.truncf %8 : vector<16x256xf32> to vector<16x256xbf16>
    %c0_7 = arith.constant 0 : index
    %c0_8 = arith.constant 0 : index
    %10 = vector.load %arg6[%c0_7, %c0_8] : memref<3x256xf32, #tpu.memory_space<vmem>>, vector<1x256xf32>
    %11 = arith.truncf %10 : vector<1x256xf32> to vector<1x256xbf16>
    %12 = vector.broadcast %11 : vector<1x256xbf16> to vector<16x256xbf16>
    %13 = arith.addf %9, %12 : vector<16x256xbf16>
    %cst_9 = arith.constant 1.000980e-02 : bf16
    %14 = vector.broadcast %cst_9 : bf16 to vector<16x256xbf16>
    %15 = arith.mulf %14, %13 : vector<16x256xbf16>
    %16 = arith.maximumf %13, %15 : vector<16x256xbf16>
    %c0_10 = arith.constant 0 : index
    %c0_11 = arith.constant 0 : index
    %17 = vector.load %arg4[%c0_10, %c0_11] : memref<256x128xbf16, #tpu.memory_space<vmem>>, vector<256x128xbf16>
    %cst_12 = arith.constant dense<0.000000e+00> : vector<16x128xf32>
    %18 = tpu.matmul %16, %17, %cst_12 {dimension_numbers = #tpu.dot_dimension_numbers<[1], [0], [0], [1], [0, 0, 1, 1], [], []>} : vector<16x256xbf16>, vector<256x128xbf16>, vector<16x128xf32> -> vector<16x128xf32>
    %19 = arith.truncf %18 : vector<16x128xf32> to vector<16x128xbf16>
    %c1 = arith.constant 1 : index
    %c0_13 = arith.constant 0 : index
    %20 = vector.load %arg6[%c1, %c0_13] : memref<3x256xf32, #tpu.memory_space<vmem>>, vector<1x128xf32>
    %21 = arith.truncf %20 : vector<1x128xf32> to vector<1x128xbf16>
    %22 = vector.broadcast %21 : vector<1x128xbf16> to vector<16x128xbf16>
    %23 = arith.addf %19, %22 : vector<16x128xbf16>
    %cst_14 = arith.constant 1.000980e-02 : bf16
    %24 = vector.broadcast %cst_14 : bf16 to vector<16x128xbf16>
    %25 = arith.mulf %24, %23 : vector<16x128xbf16>
    %26 = arith.maximumf %23, %25 : vector<16x128xbf16>
    %c0_15 = arith.constant 0 : index
    %c0_16 = arith.constant 0 : index
    %27 = vector.load %arg5[%c0_15, %c0_16] : memref<128x128xbf16, #tpu.memory_space<vmem>>, vector<128x128xbf16>
    %cst_17 = arith.constant dense<0.000000e+00> : vector<16x128xf32>
    %28 = tpu.matmul %26, %27, %cst_17 {dimension_numbers = #tpu.dot_dimension_numbers<[1], [0], [0], [1], [0, 0, 1, 1], [], []>} : vector<16x128xbf16>, vector<128x128xbf16>, vector<16x128xf32> -> vector<16x128xf32>
    %c2 = arith.constant 2 : index
    %c0_18 = arith.constant 0 : index
    %29 = vector.load %arg6[%c2, %c0_18] : memref<3x256xf32, #tpu.memory_space<vmem>>, vector<1x128xf32>
    %30 = vector.broadcast %29 : vector<1x128xf32> to vector<16x128xf32>
    %31 = arith.addf %28, %30 : vector<16x128xf32>
    %32 = arith.truncf %31 : vector<16x128xf32> to vector<16x128xbf16>
    %c0_19 = arith.constant 0 : index
    %c0_20 = arith.constant 0 : index
    %33 = vector.load %arg7[%c0_19, %c0_20] : memref<16x128xbf16, #tpu.memory_space<vmem>>, vector<16x128xbf16>
    tpu.vector_store %arg7[%c0_19, %c0_20], %32 {strides = array<i32>} : memref<16x128xbf16, #tpu.memory_space<vmem>>, vector<16x128xbf16>,
    return
  }
  func.func @transform_0(%arg0: i32) -> (i32, i32) {
    %c0_i32 = arith.constant 0 : i32
    %c0_i32_0 = arith.constant 0 : i32
    return %arg0, %c0_i32 : i32, i32
  }
  func.func @transform_1(%arg0: i32) -> (i32, i32) {
    %c0_i32 = arith.constant 0 : i32
    %c0_i32_0 = arith.constant 0 : i32
    %c0_i32_1 = arith.constant 0 : i32
    return %c0_i32, %c0_i32_0 : i32, i32
  }
  func.func @transform_2(%arg0: i32) -> (i32, i32) {
    %c0_i32 = arith.constant 0 : i32
    %c0_i32_0 = arith.constant 0 : i32
    %c0_i32_1 = arith.constant 0 : i32
    return %c0_i32, %c0_i32_0 : i32, i32
  }
  func.func @transform_3(%arg0: i32) -> (i32, i32) {
    %c0_i32 = arith.constant 0 : i32
    %c0_i32_0 = arith.constant 0 : i32
    %c0_i32_1 = arith.constant 0 : i32
    return %c0_i32, %c0_i32_0 : i32, i32
  }
  func.func @transform_4(%arg0: i32) -> (i32, i32) {
    %c0_i32 = arith.constant 0 : i32
    %c0_i32_0 = arith.constant 0 : i32
    %c0_i32_1 = arith.constant 0 : i32
    return %c0_i32, %c0_i32_0 : i32, i32
  }
  func.func @transform_5(%arg0: i32) -> (i32, i32) {
    %c0_i32 = arith.constant 0 : i32
    %c0_i32_0 = arith.constant 0 : i32
    %c0_i32_1 = arith.constant 0 : i32
    return %c0_i32, %c0_i32_0 : i32, i32
  }
  func.func @transform_6(%arg0: i32) -> (i32, i32) {
    %c0_i32 = arith.constant 0 : i32
    %c0_i32_0 = arith.constant 0 : i32
    return %arg0, %c0_i32 : i32, i32
  }
}

</mosaic_0001>

<bundles_post_ra>
// kernel: tpu_custom_call.1
= control target key start
LH: loop header
LB: loop body
LE: loop exit
PB: predicated region body
PF: predicated region fallthrough
CT: control target
= control target key end

     0   :  { %11 = vsyncpa [#allocation3], 0  ;;  %s1638_s0 = inlined_call_operand.hbm [shape: bf16[16,33], index: 0, kind: input, shape index: {}]   ;;  %s1639_s1 = inlined_call_operand.hbm [shape: bf16[33,512], index: 1, kind: input, shape index: {}]   ;;  %s1640_s2 = inlined_call_operand.hbm [shape: bf16[512,256], index: 2, kind: input, shape index: {}]   ;;  %s1641_s3 = inlined_call_operand.hbm [shape: bf16[256,128], index: 3, kind: input, shape index: {}]   ;;  %s1642_s4 = inlined_call_operand.hbm [shape: bf16[128,128], index: 4, kind: input, shape index: {}]   ;;  %s1643_s5 = inlined_call_operand.vmem [shape: f32[3,256], index: 5, kind: input, shape index: {}]   ;;  %s1644_s6 = inlined_call_operand.hbm [shape: bf16[16,128], index: 6, kind: output, shape index: {}]  }
   0x1   :  { %12 = vsyncpa [#allocation6], 0 }
   0x2   :  { %13 = vsyncpa [#allocation9], 0 }
   0x3   :  { %14 = vsyncpa [#allocation4], 0  ;;  %s1549_s21 = smov [#allocation5]  }
   0x4   :  { %s32_s22 = sshll.u32 %s1549_s21, 4  ;;  %s33_s22 = int_to_ptr.vmem [resolvable:$true] %s32_s22 }
   0x5   :  { %s1429_s23 = scalar_lea.vmem %s33_s22, 1280  ;;  %p1434_p1 = scmp.lt.s32.totalorder %s33_s22, %s33_s22 }
   0x6   :  { %p1430_p0 = scmp.ne.s32.totalorder %s33_s22, %s1429_s23  ;;  %p1435_p2 = scmp.lt.s32.totalorder %s1429_s23, %s1429_s23 }
   0x8   :  { %p1436_p3 = por %p1435_p2, %p1434_p1 }
   0xa   :  { %p1437_p4 = pnand %p1436_p3, %p1430_p0 }
   0xc   :  { %1440 = shalt.err (!%p1437_p4)
}
   0xd   :  { %s1550_s24 = smov 256   ;;  %s1551_s25 = smov 16  }
   0xe   :  { %38 = dma.hbm_to_vmem [thread:$0]  %s1639_s1, 1280, %s33_s22, [#allocation6], %s1550_s24, %s1550_s24, %s1551_s25  }
   0xf   :  { %s1552_s28 = smov [#allocation8]   ;;  %s1553_s30 = smov [#allocation2]  }
  0x10   :  { %s56_s29 = sshll.u32 %s1552_s28, 4  ;;  %s20_s7 = sshll.u32 %s1553_s30, 4  ;;  %s57_s29 = int_to_ptr.vmem [resolvable:$true] %s56_s29  ;;  %s21_s7 = int_to_ptr.vmem [resolvable:$true] %s20_s7 }
  0x11   :  { %s1449_s8 = scalar_lea.vmem %s57_s29, 2048  ;;  %p1454_p6 = scmp.lt.s32.totalorder %s57_s29, %s57_s29 }
  0x12   :  { %p1450_p5 = scmp.ne.s32.totalorder %s57_s29, %s1449_s8  ;;  %p1455_p7 = scmp.lt.s32.totalorder %s1449_s8, %s1449_s8 }
  0x14   :  { %p1456_p8 = por %p1455_p7, %p1454_p6 }
  0x16   :  { %p1457_p9 = pnand %p1456_p8, %p1450_p5 }
  0x18   :  { %1460 = shalt.err (!%p1457_p9)
}
  0x19   :  { %s1554_s9 = smov 64   ;;  %s1555_s10 = smov 4  }
  0x1a   :  { %62 = dma.hbm_to_vmem [thread:$0]  %s1641_s3, 2048, %s57_s29, [#allocation9], %s1554_s9, %s1554_s9, %s1555_s10  }
  0x1b   :  { %s1469_s1 = scalar_lea.vmem %s21_s7, 128  ;;  %p1474_p11 = scmp.lt.s32.totalorder %s21_s7, %s21_s7 }
  0x1c   :  { %p1470_p10 = scmp.ne.s32.totalorder %s21_s7, %s1469_s1  ;;  %p1475_p12 = scmp.lt.s32.totalorder %s1469_s1, %s1469_s1 }
  0x1e   :  { %p1476_p13 = por %p1475_p12, %p1474_p11 }
  0x20   :  { %p1477_p0 = pnand %p1476_p13, %p1470_p10 }
  0x22   :  { %1480 = shalt.err (!%p1477_p0)
}
  0x23   :  { %26 = dma.hbm_to_vmem [thread:$0]  %s1638_s0, 128, %s21_s7, [#allocation3], %s1554_s9, %s1554_s9, %s1555_s10  }
  0x24   :  { %s1556_s15 = smov [#allocation7]  }
  0x25   :  { %s44_s16 = sshll.u32 %s1556_s15, 4  ;;  %s45_s16 = int_to_ptr.vmem [resolvable:$true] %s44_s16 }
  0x26   :  { %s1489_s17 = scalar_lea.vmem %s45_s16, 8192  ;;  %p1494_p2 = scmp.lt.s32.totalorder %s45_s16, %s45_s16 }
  0x27   :  { %p1490_p1 = scmp.ne.s32.totalorder %s45_s16, %s1489_s17  ;;  %p1495_p3 = scmp.lt.s32.totalorder %s1489_s17, %s1489_s17 }
  0x29   :  { %p1496_p4 = por %p1495_p3, %p1494_p2 }
  0x2b   :  { %p1497_p5 = pnand %p1496_p4, %p1490_p1 }
  0x2d   :  { %1500 = shalt.err (!%p1497_p5)
}
  0x2e   :  { %s1557_s3 = smov 128   ;;  %s1558_s18 = smov 8  }
  0x2f   :  { %50 = dma.hbm_to_vmem [thread:$0]  %s1640_s2, 8192, %s45_s16, [#allocation6], %s1557_s3, %s1557_s3, %s1558_s18  }
  0x30   :  { %s1559_s21 = smov [#allocation10]  }
  0x31   :  { %s68_s22 = sshll.u32 %s1559_s21, 4  ;;  %s69_s22 = int_to_ptr.vmem [resolvable:$true] %s68_s22 }
  0x32   :  { %s1509_s0 = scalar_lea.vmem %s69_s22, 1024  ;;  %p1514_p7 = scmp.lt.s32.totalorder %s69_s22, %s69_s22 }
  0x33   :  { %p1510_p6 = scmp.ne.s32.totalorder %s69_s22, %s1509_s0  ;;  %p1515_p8 = scmp.lt.s32.totalorder %s1509_s0, %s1509_s0 }
  0x35   :  { %p1516_p9 = por %p1515_p8, %p1514_p7 }
  0x37   :  { %p1517_p10 = pnand %p1516_p9, %p1510_p6 }
  0x39   :  { %1520 = shalt.err (!%p1517_p10)
}
  0x3a   :  { %74 = dma.hbm_to_vmem [thread:$0]  %s1642_s4, 1024, %s69_s22, [#allocation9], %s1554_s9, %s1554_s9, %s1555_s10  }
  0x3b   :  { %1541 = dma.done.wait [#allocation3], 128  }
  0x3c   :  { %1542 = vsyncadd [#allocation3], 4294967168 }
  0x3d   :  { %1543 = dma.done.wait [#allocation6], 9472  }
  0x3e   :  { %1544 = vsyncadd [#allocation6], 4294957824 }
  0x3f   :  { %1545 = dma.done.wait [#allocation9], 3072  }
  0x40   :  { %1546 = vsyncadd [#allocation9], 4294964224  ;;  %v1560_v0 = vmov 0   ;;  %vm165_vm0 = vcmask 1040384   ;;  %v104_v1 = vld [vmem:[#allocation5 + $0x40] sm:$0x11] }
  0x41   :  { %212 = vmatprep.mubr.bf16.mxu0 %v1560_v0  ;;  %255 = vmatprep.mubr.bf16.mxu1 %v1560_v0  ;;  %v167_v2 = vsel %vm165_vm0, 65535, %v1560_v0  ;;  %v105_v3 = vld [vmem:[#allocation5 + $0x48] sm:$0x11]  ;;  %v1115_v4 = vcombine.high %v104_v1, %v104_v1  ;;  %v1114_v6 = vcombine.low %v104_v1, %v104_v1  ;;  %v1288_v8 = vld [vmem:[#allocation5 + $0x24] ss:$16 sps:$4 sm:$0xff]   ;;  %v1300_v22 = vld [vmem:[#allocation2] sm:$0xff]  }
  0x42   :  { %v1117_v5 = vcombine.high %v105_v3, %v105_v3  ;;  %v1116_v7 = vcombine.low %v105_v3, %v105_v3  ;;  %v1290_v13 = vld [vmem:[#allocation5 + $0x2c] ss:$16 sps:$4 sm:$0xff]   ;;  %v1292_v14 = vld [vmem:[#allocation5 + $0x20] ss:$16 sps:$4 sm:$0xff]   ;;  %v1293_v15 = vld [vmem:[#allocation5 + $0x28] ss:$16 sps:$4 sm:$0xff]  }
  0x43   :  { %v172_v9 = vand.u32 %v1115_v4, %v167_v2  ;;  %v169_v11 = vand.u32 %v1114_v6, %v167_v2  ;;  %v1294_v16 = vld [vmem:[#allocation5 + $0x4] ss:$16 sps:$4 sm:$0xff]   ;;  %v1296_v17 = vld [vmem:[#allocation5 + $0xc] ss:$16 sps:$4 sm:$0xff]   ;;  %v1298_v18 = vld [vmem:[#allocation5] ss:$16 sps:$4 sm:$0xff]  }
  0x44   :  { %v178_v10 = vand.u32 %v1117_v5, %v167_v2  ;;  %v175_v12 = vand.u32 %v1116_v7, %v167_v2  ;;  %v1299_v19 = vld [vmem:[#allocation5 + $0x8] ss:$16 sps:$4 sm:$0xff]   ;;  %v1303_v20 = vld [vmem:[#allocation7 + $0x74] ss:$8 sps:$4 sm:$0xff]   ;;  %vm161_vm1 = vcmask 269312   ;;  %vm1562_vm2 = vmmov 0  }
  0x45   :  { %190 = vmatprep.subr.bf16.mxu0 %v172_v9  ;;  %v1306_v21 = vld [vmem:[#allocation7 + $0x174] ss:$8 sps:$4 sm:$0xff]   ;;  %v1301_v23 = vld [vmem:[#allocation7 + $0x70] ss:$8 sps:$4 sm:$0xff]   ;;  %v1309_v25 = vld [vmem:[#allocation7 + $0x64] ss:$8 sps:$4 sm:$0xff]  }
  0x46   :  { %233 = vmatprep.subr.bf16.mxu1 %v178_v10  ;;  %191 = vmatpush1.bf16.msra.mxu0 %v169_v11  ;;  %v1304_v24 = vld [vmem:[#allocation7 + $0x170] ss:$8 sps:$4 sm:$0xff]   ;;  %v1312_v26 = vld [vmem:[#allocation7 + $0x164] ss:$8 sps:$4 sm:$0xff]   ;;  %v1307_v27 = vld [vmem:[#allocation7 + $0x60] ss:$8 sps:$4 sm:$0xff]  }
  0x47   :  { %234 = vmatpush1.bf16.msra.mxu1 %v175_v12  ;;  %192 = vmatprep.subr.bf16.mxu0 %v1288_v8  ;;  %v1310_v28 = vld [vmem:[#allocation7 + $0x160] ss:$8 sps:$4 sm:$0xff]   ;;  %v1315_v29 = vld [vmem:[#allocation7 + $0x54] ss:$8 sps:$4 sm:$0xff]   ;;  %v1313_v31 = vld [vmem:[#allocation7 + $0x50] ss:$8 sps:$4 sm:$0xff]  }
  0x48   :  { %235 = vmatprep.subr.bf16.mxu1 %v1290_v13  ;;  %v1318_v30 = vld [vmem:[#allocation7 + $0x154] ss:$8 sps:$4 sm:$0xff]   ;;  %v1316_v32 = vld [vmem:[#allocation7 + $0x150] ss:$8 sps:$4 sm:$0xff]   ;;  %v1321_v33 = vld [vmem:[#allocation7 + $0x44] ss:$8 sps:$4 sm:$0xff]  }
  0x49   :  { %v1324_v34 = vld [vmem:[#allocation7 + $0x144] ss:$8 sps:$4 sm:$0xff]   ;;  %v1319_v35 = vld [vmem:[#allocation7 + $0x40] ss:$8 sps:$4 sm:$0xff]   ;;  %v1327_v37 = vld [vmem:[#allocation7 + $0x34] ss:$8 sps:$4 sm:$0xff]  }
  0x4a   :  { %193 = vmatpush1.bf16.msra.mxu0 %v1292_v14  ;;  %v1322_v36 = vld [vmem:[#allocation7 + $0x140] ss:$8 sps:$4 sm:$0xff]   ;;  %v1330_v38 = vld [vmem:[#allocation7 + $0x134] ss:$8 sps:$4 sm:$0xff]   ;;  %v1325_v39 = vld [vmem:[#allocation7 + $0x30] ss:$8 sps:$4 sm:$0xff]  }
  0x4b   :  { %236 = vmatpush1.bf16.msra.mxu1 %v1293_v15  ;;  %194 = vmatprep.subr.bf16.mxu0 %v1294_v16  ;;  %v1328_v40 = vld [vmem:[#allocation7 + $0x130] ss:$8 sps:$4 sm:$0xff]   ;;  %v1333_v41 = vld [vmem:[#allocation7 + $0x24] ss:$8 sps:$4 sm:$0xff]   ;;  %v1331_v43 = vld [vmem:[#allocation7 + $0x20] ss:$8 sps:$4 sm:$0xff]  }
  0x4c   :  { %237 = vmatprep.subr.bf16.mxu1 %v1296_v17  ;;  %v1336_v42 = vld [vmem:[#allocation7 + $0x124] ss:$8 sps:$4 sm:$0xff]   ;;  %v1334_v44 = vld [vmem:[#allocation7 + $0x120] ss:$8 sps:$4 sm:$0xff]   ;;  %v1339_v45 = vld [vmem:[#allocation7 + $0x14] ss:$8 sps:$4 sm:$0xff]  }
  0x4d   :  { %v1342_v46 = vld [vmem:[#allocation7 + $0x114] ss:$8 sps:$4 sm:$0xff]   ;;  %v1337_v47 = vld [vmem:[#allocation7 + $0x10] ss:$8 sps:$4 sm:$0xff]   ;;  %v1345_v49 = vld [vmem:[#allocation7 + $0x4] ss:$8 sps:$4 sm:$0xff]  }
  0x4e   :  { %195 = vmatpush1.bf16.msra.mxu0 %v1298_v18  ;;  %v1340_v48 = vld [vmem:[#allocation7 + $0x110] ss:$8 sps:$4 sm:$0xff]   ;;  %v1348_v50 = vld [vmem:[#allocation7 + $0x104] ss:$8 sps:$4 sm:$0xff]   ;;  %v1343_v51 = vld [vmem:[#allocation7] ss:$8 sps:$4 sm:$0xff]  }
  0x4f   :  { %238 = vmatpush1.bf16.msra.mxu1 %v1299_v19  ;;  %662 = vmatprep.subr.bf16.mxu0 %v1303_v20  ;;  %v1346_v52 = vld [vmem:[#allocation7 + $0x100] ss:$8 sps:$4 sm:$0xff]   ;;  %v1351_v53 = vld [vmem:[#allocation7 + $0xf4] ss:$8 sps:$4 sm:$0xff]   ;;  %v1349_v55 = vld [vmem:[#allocation7 + $0xf0] ss:$8 sps:$4 sm:$0xff]  }
  0x50   :  { %705 = vmatprep.subr.bf16.mxu1 %v1306_v21  ;;  %v1354_v54 = vld [vmem:[#allocation7 + $0x1f4] ss:$8 sps:$4 sm:$0xff]   ;;  %v1352_v56 = vld [vmem:[#allocation7 + $0x1f0] ss:$8 sps:$4 sm:$0xff]   ;;  %v1357_v57 = vld [vmem:[#allocation7 + $0xe4] ss:$8 sps:$4 sm:$0xff]  }
  0x51   :  { %1118 = vmatmul.mubr.msk.bf16.vlgmr.msra.gmra.mxu0 %vm161_vm1, %v1300_v22  ;;  %v1360_v58 = vld [vmem:[#allocation7 + $0x1e4] ss:$8 sps:$4 sm:$0xff]   ;;  %v1355_v59 = vld [vmem:[#allocation7 + $0xe0] ss:$8 sps:$4 sm:$0xff]   ;;  %v1363_v61 = vld [vmem:[#allocation7 + $0xd4] ss:$8 sps:$4 sm:$0xff]  }
  0x52   :  { %1119 = vmatmul.mubr.msk.bf16.vlgmr.msra.gmra.mxu1 %vm161_vm1, %v1300_v22  ;;  %663 = vmatpush1.bf16.msra.mxu0 %v1301_v23  ;;  %v1358_v60 = vld [vmem:[#allocation7 + $0x1e0] ss:$8 sps:$4 sm:$0xff]   ;;  %v1366_v62 = vld [vmem:[#allocation7 + $0x1d4] ss:$8 sps:$4 sm:$0xff]   ;;  %v1361_v63 = vld [vmem:[#allocation7 + $0xd0] ss:$8 sps:$4 sm:$0xff]  }
  0x53   :  { %706 = vmatpush1.bf16.msra.mxu1 %v1304_v24  ;;  %664 = vmatprep.subr.bf16.mxu0 %v1309_v25  ;;  %v1364_v0 = vld [vmem:[#allocation7 + $0x1d0] ss:$8 sps:$4 sm:$0xff]   ;;  %v1369_v1 = vld [vmem:[#allocation7 + $0xc4] ss:$8 sps:$4 sm:$0xff]   ;;  %v1367_v3 = vld [vmem:[#allocation7 + $0xc0] ss:$8 sps:$4 sm:$0xff]  }
  0x54   :  { %707 = vmatprep.subr.bf16.mxu1 %v1312_v26  ;;  %v1372_v2 = vld [vmem:[#allocation7 + $0x1c4] ss:$8 sps:$4 sm:$0xff]   ;;  %v1370_v4 = vld [vmem:[#allocation7 + $0x1c0] ss:$8 sps:$4 sm:$0xff]   ;;  %v1375_v5 = vld [vmem:[#allocation7 + $0xb4] ss:$8 sps:$4 sm:$0xff]  }
  0x55   :  { %v1378_v6 = vld [vmem:[#allocation7 + $0x1b4] ss:$8 sps:$4 sm:$0xff]   ;;  %v1373_v7 = vld [vmem:[#allocation7 + $0xb0] ss:$8 sps:$4 sm:$0xff]   ;;  %v1381_v9 = vld [vmem:[#allocation7 + $0xa4] ss:$8 sps:$4 sm:$0xff]  }
  0x56   :  { %665 = vmatpush1.bf16.msra.mxu0 %v1307_v27  ;;  %v1376_v8 = vld [vmem:[#allocation7 + $0x1b0] ss:$8 sps:$4 sm:$0xff]   ;;  %v1384_v10 = vld [vmem:[#allocation7 + $0x1a4] ss:$8 sps:$4 sm:$0xff]   ;;  %v1379_v11 = vld [vmem:[#allocation7 + $0xa0] ss:$8 sps:$4 sm:$0xff]  }
  0x57   :  { %708 = vmatpush1.bf16.msra.mxu1 %v1310_v28  ;;  %666 = vmatprep.subr.bf16.mxu0 %v1315_v29  ;;  %v1382_v12 = vld [vmem:[#allocation7 + $0x1a0] ss:$8 sps:$4 sm:$0xff]   ;;  %v1387_v13 = vld [vmem:[#allocation7 + $0x94] ss:$8 sps:$4 sm:$0xff]   ;;  %v1385_v15 = vld [vmem:[#allocation7 + $0x90] ss:$8 sps:$4 sm:$0xff]  }
  0x58   :  { %709 = vmatprep.subr.bf16.mxu1 %v1318_v30  ;;  %v1390_v14 = vld [vmem:[#allocation7 + $0x194] ss:$8 sps:$4 sm:$0xff]   ;;  %v1388_v16 = vld [vmem:[#allocation7 + $0x190] ss:$8 sps:$4 sm:$0xff]   ;;  %v1393_v17 = vld [vmem:[#allocation7 + $0x84] ss:$8 sps:$4 sm:$0xff]  }
  0x59   :  { %v1396_v18 = vld [vmem:[#allocation7 + $0x184] ss:$8 sps:$4 sm:$0xff]   ;;  %v1391_v19 = vld [vmem:[#allocation7 + $0x80] ss:$8 sps:$4 sm:$0xff]   ;;  %v1397_v21 = vld [vmem:[#allocation8 + $0x78] sm:$0xff]   ;;  %s1563_s29 = smov [#allocation11]  }
  0x5a   :  { %667 = vmatpush1.bf16.msra.mxu0 %v1313_v31  ;;  %v1394_v20 = vld [vmem:[#allocation7 + $0x180] ss:$8 sps:$4 sm:$0xff]   ;;  %s1091_s30 = sshll.u32 %s1563_s29, 4  ;;  %s1092_s30 = int_to_ptr.vmem [resolvable:$true] %s1091_s30 }
  0x5b   :  { %710 = vmatpush1.bf16.msra.mxu1 %v1316_v32  ;;  %668 = vmatprep.subr.bf16.mxu0 %v1321_v33  ;;  %s1521_s7 = scalar_lea.vmem %s1092_s30, 128  ;;  %p1526_p12 = scmp.lt.s32.totalorder %s1092_s30, %s1092_s30 }
  0x5c   :  { %711 = vmatprep.subr.bf16.mxu1 %v1324_v34  ;;  %p1522_p11 = scmp.ne.s32.totalorder %s1092_s30, %s1521_s7  ;;  %p1527_p13 = scmp.lt.s32.totalorder %s1521_s7, %s1521_s7 }
  0x5e   :  { %669 = vmatpush1.bf16.msra.mxu0 %v1319_v35  ;;  %p1528_p0 = por %p1527_p13, %p1526_p12 }
  0x5f   :  { %712 = vmatpush1.bf16.msra.mxu1 %v1322_v36  ;;  %670 = vmatprep.subr.bf16.mxu0 %v1327_v37 }
  0x60   :  { %713 = vmatprep.subr.bf16.mxu1 %v1330_v38  ;;  %p1529_p1 = pnand %p1528_p0, %p1522_p11 }
  0x62   :  { %671 = vmatpush1.bf16.msra.mxu0 %v1325_v39 }
  0x63   :  { %714 = vmatpush1.bf16.msra.mxu1 %v1328_v40  ;;  %672 = vmatprep.subr.bf16.mxu0 %v1333_v41  ;;  %v1398_v40 = vld [vmem:[#allocation8 + $0x38] sm:$0xff]  }
  0x64   :  { %715 = vmatprep.subr.bf16.mxu1 %v1336_v42 }
  0x66   :  { %673 = vmatpush1.bf16.msra.mxu0 %v1331_v43  ;;  %v1399_v43 = vld [vmem:[#allocation8 + $0x70] sm:$0xff]  }
  0x67   :  { %716 = vmatpush1.bf16.msra.mxu1 %v1334_v44  ;;  %674 = vmatprep.subr.bf16.mxu0 %v1339_v45  ;;  %v1400_v44 = vld [vmem:[#allocation8 + $0x30] sm:$0xff]   ;;  %v1401_v45 = vld [vmem:[#allocation8 + $0x68] sm:$0xff]  }
  0x68   :  { %717 = vmatprep.subr.bf16.mxu1 %v1342_v46  ;;  %v1402_v46 = vld [vmem:[#allocation8 + $0x28] sm:$0xff]  }
  0x6a   :  { %675 = vmatpush1.bf16.msra.mxu0 %v1337_v47  ;;  %v1403_v47 = vld [vmem:[#allocation8 + $0x60] sm:$0xff]  }
  0x6b   :  { %718 = vmatpush1.bf16.msra.mxu1 %v1340_v48  ;;  %676 = vmatprep.subr.bf16.mxu0 %v1345_v49  ;;  %v1404_v48 = vld [vmem:[#allocation8 + $0x20] sm:$0xff]   ;;  %v1405_v49 = vld [vmem:[#allocation8 + $0x58] sm:$0xff]  }
  0x6c   :  { %719 = vmatprep.subr.bf16.mxu1 %v1348_v50  ;;  %v1406_v50 = vld [vmem:[#allocation8 + $0x18] sm:$0xff]  }
  0x6e   :  { %677 = vmatpush1.bf16.msra.mxu0 %v1343_v51  ;;  %v1407_v51 = vld [vmem:[#allocation8 + $0x50] sm:$0xff]  }
  0x6f   :  { %720 = vmatpush1.bf16.msra.mxu1 %v1346_v52  ;;  %678 = vmatprep.subr.bf16.mxu0 %v1351_v53  ;;  %v1408_v52 = vld [vmem:[#allocation8 + $0x10] sm:$0xff]   ;;  %v1409_v53 = vld [vmem:[#allocation8 + $0x48] sm:$0xff]  }
  0x70   :  { %721 = vmatprep.subr.bf16.mxu1 %v1354_v54  ;;  %v1410_v54 = vld [vmem:[#allocation8 + $0x8] sm:$0xff]  }
  0x72   :  { %679 = vmatpush2.bf16.msra.mxu0 %v1349_v55  ;;  %v1411_v55 = vld [vmem:[#allocation8 + $0x40] sm:$0xff]  }
  0x73   :  { %722 = vmatpush2.bf16.msra.mxu1 %v1352_v56  ;;  %680 = vmatprep.subr.bf16.mxu0 %v1357_v57  ;;  %v1412_v56 = vld [vmem:[#allocation8] sm:$0xff]   ;;  %v1413_v57 = vld [vmem:[#allocation10 + $0x38] sm:$0xff]  }
  0x74   :  { %723 = vmatprep.subr.bf16.mxu1 %v1360_v58  ;;  %v1561_v58 = vmov 0.0  }
  0x76   :  { %681 = vmatpush2.bf16.msra.mxu0 %v1355_v59  ;;  %v1414_v59 = vld [vmem:[#allocation10 + $0x30] sm:$0xff]  }
  0x77   :  { %724 = vmatpush2.bf16.msra.mxu1 %v1358_v60  ;;  %682 = vmatprep.subr.bf16.mxu0 %v1363_v61  ;;  %v1415_v60 = vld [vmem:[#allocation10 + $0x28] sm:$0xff]   ;;  %v1416_v61 = vld [vmem:[#allocation10 + $0x20] sm:$0xff]  }
  0x78   :  { %725 = vmatprep.subr.bf16.mxu1 %v1366_v62  ;;  %v752_v62 = vlaneseq }
  0x7a   :  { %683 = vmatpush2.bf16.msra.mxu0 %v1361_v63  ;;  %v753_v63 = vshrl.u32 %v752_v62, 7 }
  0x7b   :  { %726 = vmatpush2.bf16.msra.mxu1 %v1364_v0  ;;  %684 = vmatprep.subr.bf16.mxu0 %v1369_v1  ;;  %v750_v1 = vld [vmem:[%s1643_s5] ss:$4 sm:$0x3] }
  0x7c   :  { %727 = vmatprep.subr.bf16.mxu1 %v1372_v2  ;;  %v754_v0 = vsub.s32 0, %v753_v63  ;;  %v758_v2 = vsub.s32 1, %v753_v63 }
  0x7e   :  { %685 = vmatpush2.bf16.msra.mxu0 %v1367_v3  ;;  %v755_v3 = vrot.slane %v750_v1, %v754_v0 }
  0x7f   :  { %728 = vmatpush2.bf16.msra.mxu1 %v1370_v4  ;;  %686 = vmatprep.subr.bf16.mxu0 %v1375_v5  ;;  %v759_v4 = vrot.slane %v750_v1, %v758_v2 }
  0x80   :  { %729 = vmatprep.subr.bf16.mxu1 %v1378_v6  ;;  %v762_v5 = vpack.c.bf16 %v755_v3, %v755_v3 }
  0x81   :  { %v763_v6 = vpack.c.bf16 %v759_v4, %v759_v4 }
  0x82   :  { %687 = vmatpush2.bf16.msra.mxu0 %v1373_v7 }
  0x83   :  { %730 = vmatpush2.bf16.msra.mxu1 %v1376_v8  ;;  %688 = vmatprep.subr.bf16.mxu0 %v1381_v9  ;;  %v765_v9 = vpack.i.b16 %v762_v5, %v762_v5 }
  0x84   :  { %731 = vmatprep.subr.bf16.mxu1 %v1384_v10 }
  0x86   :  { %689 = vmatpush2.bf16.msra.mxu0 %v1379_v11 }
  0x87   :  { %732 = vmatpush2.bf16.msra.mxu1 %v1382_v12  ;;  %690 = vmatprep.subr.bf16.mxu0 %v1387_v13  ;;  %v772_v12 = vpack.i.b16 %v763_v6, %v763_v6 }
  0x88   :  { %733 = vmatprep.subr.bf16.mxu1 %v1390_v14 }
  0x8a   :  { %691 = vmatpush2.bf16.msra.mxu0 %v1385_v15 }
  0x8b   :  { %734 = vmatpush2.bf16.msra.mxu1 %v1388_v16  ;;  %692 = vmatprep.subr.bf16.mxu0 %v1393_v17  ;;  %v770_v17 = vrot.slane %v765_v9, %v754_v0 }
  0x8c   :  { %735 = vmatprep.subr.bf16.mxu1 %v1396_v18 }
  0x8e   :  { %693 = vmatpush2.bf16.msra.mxu0 %v1391_v19 }
  0x8f   :  { %736 = vmatpush2.bf16.msra.mxu1 %v1394_v20  ;;  %1218 = vmatprep.subr.bf16.mxu0 %v1397_v21 }
  0x90   :  { %1249 = vmatprep.subr.bf16.mxu1 %v1561_v58 }
 0x111   :  { %v214_v22 = vpop.f32.mrf.mxu0 }
 0x112   :  { %v257_v23 = vpop.f32.mrf.mxu1 }
 0x113   :  { %v216_v24 = vpop.f32.mrf.mxu0 }
 0x114   :  { %v259_v25 = vpop.f32.mrf.mxu1 }
 0x115   :  { %v218_v26 = vpop.f32.mrf.mxu0 }
 0x116   :  { %v261_v27 = vpop.f32.mrf.mxu1  ;;  %v266_v28 = vpack.c.bf16 %v218_v26, %v214_v22 }
 0x117   :  { %v268_v29 = vpack.c.bf16 %v261_v27, %v257_v23  ;;  %v220_v30 = vpop.f32.mrf.mxu0  ;;  %v777_v23 = vrot.slane %v772_v12, %v754_v0 }
 0x118   :  { %v263_v31 = vpop.f32.mrf.mxu1  ;;  %v267_v32 = vpack.c.bf16 %v220_v30, %v216_v24  ;;  %v270_v34 = vmul.bf16 1009007652, %v266_v28 }
 0x119   :  { %v269_v33 = vpack.c.bf16 %v263_v31, %v259_v25  ;;  %v272_v35 = vmul.bf16 1009007652, %v268_v29  ;;  %v1417_v31 = vld [vmem:[#allocation10 + $0x18] sm:$0xff]  }
 0x11a   :  { %v271_v36 = vmul.bf16 1009007652, %v267_v32  ;;  %v274_v41 = vmax.bf16 %v270_v34, %v266_v28  ;;  %v1420_v34 = vld [vmem:[#allocation10] sm:$0xff]  }
 0x11b   :  { %v273_v37 = vmul.bf16 1009007652, %v269_v33  ;;  %v276_v42 = vmax.bf16 %v272_v35, %v268_v29  ;;  %v954_v35 = vld [vmem:[%s1643_s5 + $0x1] sm:$0x1] }
 0x11c   :  { %v275_v38 = vmax.bf16 %v271_v36, %v267_v32  ;;  %v1418_v32 = vld [vmem:[#allocation10 + $0x10] sm:$0xff]   ;;  %v955_v36 = vpack.c.bf16 %v954_v35, %v954_v35 }
 0x11d   :  { %v277_v39 = vmax.bf16 %v273_v37, %v269_v33  ;;  %v1419_v33 = vld [vmem:[#allocation10 + $0x8] sm:$0xff]  }
 0x11e   :  { %694 = vmatprep.mubr.bf16.mxu0 %v275_v38 }
 0x11f   :  { %737 = vmatprep.mubr.bf16.mxu1 %v277_v39  ;;  %695 = vmatmul.mubr.bf16.vlgmr.msra.gmra.mxu0 %v274_v41  ;;  %v957_v39 = vpack.i.b16 %v955_v36, %v955_v36 }
 0x120   :  { %738 = vmatmul.mubr.bf16.vlgmr.msra.gmra.mxu1 %v276_v42  ;;  %1219 = vmatpush3.bf16.msra.mxu0 %v1398_v40 }
 0x121   :  { %1220 = vmatprep.subr.bf16.mxu0 %v1399_v43  ;;  %1250 = vmatpush3.bf16.msra.mxu1 %v1413_v57 }
 0x122   :  { %1251 = vmatprep.subr.bf16.mxu1 %v1561_v58  ;;  %1265 = vmatprep.mubr.msk.bf16.mxu1 %vm1562_vm2, %v1561_v58 }
 0x124   :  { %1221 = vmatpush3.bf16.msra.mxu0 %v1400_v44  ;;  %v962_v44 = vrot.slane %v957_v39, %v754_v0 }
 0x125   :  { %1222 = vmatprep.subr.bf16.mxu0 %v1401_v45  ;;  %1252 = vmatpush3.bf16.msra.mxu1 %v1414_v59 }
 0x126   :  { %1253 = vmatprep.subr.bf16.mxu1 %v1561_v58 }
 0x128   :  { %1223 = vmatpush3.bf16.msra.mxu0 %v1402_v46 }
 0x129   :  { %1224 = vmatprep.subr.bf16.mxu0 %v1403_v47  ;;  %1254 = vmatpush3.bf16.msra.mxu1 %v1415_v60 }
 0x12a   :  { %1255 = vmatprep.subr.bf16.mxu1 %v1561_v58 }
 0x12c   :  { %1225 = vmatpush3.bf16.msra.mxu0 %v1404_v48 }
 0x12d   :  { %1226 = vmatprep.subr.bf16.mxu0 %v1405_v49  ;;  %1256 = vmatpush3.bf16.msra.mxu1 %v1416_v61 }
 0x12e   :  { %1257 = vmatprep.subr.bf16.mxu1 %v1561_v58 }
 0x130   :  { %1227 = vmatpush3.bf16.msra.mxu0 %v1406_v50  ;;  %v1200_v50 = vld [vmem:[%s1643_s5 + $0x2] ss:$0 sm:$0xff] }
 0x131   :  { %1228 = vmatprep.subr.bf16.mxu0 %v1407_v51  ;;  %1258 = vmatpush3.bf16.msra.mxu1 %v1417_v31 }
 0x132   :  { %1259 = vmatprep.subr.bf16.mxu1 %v1561_v58 }
 0x134   :  { %1229 = vmatpush3.bf16.msra.mxu0 %v1408_v52 }
 0x135   :  { %1230 = vmatprep.subr.bf16.mxu0 %v1409_v53  ;;  %1260 = vmatpush3.bf16.msra.mxu1 %v1418_v32 }
 0x136   :  { %1261 = vmatprep.subr.bf16.mxu1 %v1561_v58 }
 0x138   :  { %1231 = vmatpush3.bf16.msra.mxu0 %v1410_v54 }
 0x139   :  { %1232 = vmatprep.subr.bf16.mxu0 %v1411_v55  ;;  %1262 = vmatpush3.bf16.msra.mxu1 %v1419_v33 }
 0x13a   :  { %1263 = vmatprep.subr.bf16.mxu1 %v1561_v58 }
 0x13c   :  { %1233 = vmatpush3.bf16.msra.mxu0 %v1412_v56 }
 0x13d   :  { %1264 = vmatpush3.bf16.msra.mxu1 %v1420_v34 }
 0x1df   :  { %v696_v7 = vpop.f32.mrf.mxu0 }
 0x1e0   :  { %v739_v8 = vpop.f32.mrf.mxu1 }
 0x1e1   :  { %v698_v10 = vpop.f32.mrf.mxu0  ;;  %v740_v15 = vadd.f32 %v739_v8, %v696_v7 }
 0x1e2   :  { %v741_v11 = vpop.f32.mrf.mxu1 }
 0x1e3   :  { %v700_v13 = vpop.f32.mrf.mxu0  ;;  %v742_v20 = vadd.f32 %v741_v11, %v698_v10 }
 0x1e4   :  { %v743_v14 = vpop.f32.mrf.mxu1 }
 0x1e5   :  { %v744_v16 = vadd.f32 %v743_v14, %v700_v13  ;;  %v702_v18 = vpop.f32.mrf.mxu0 }
 0x1e6   :  { %v745_v19 = vpop.f32.mrf.mxu1 }
 0x1e7   :  { %v748_v21 = vpack.c.bf16 %v744_v16, %v740_v15  ;;  %v746_v22 = vadd.f32 %v745_v19, %v702_v18 }
 0x1e9   :  { %v778_v24 = vadd.bf16 %v770_v17, %v748_v21  ;;  %v749_v25 = vpack.c.bf16 %v746_v22, %v742_v20 }
 0x1eb   :  { %v779_v26 = vadd.bf16 %v777_v23, %v749_v25  ;;  %v780_v27 = vmul.bf16 1009007652, %v778_v24 }
 0x1ed   :  { %v781_v28 = vmul.bf16 1009007652, %v779_v26  ;;  %v782_v30 = vmax.bf16 %v780_v27, %v778_v24 }
 0x1ef   :  { %v783_v29 = vmax.bf16 %v781_v28, %v779_v26 }
 0x1f1   :  { %944 = vmatprep.mubr.bf16.mxu0 %v783_v29 }
 0x1f2   :  { %945 = vmatmul.mubr.bf16.vlgmr.msra.gmra.mxu0 %v782_v30 }
 0x2b2   :  { %v1234_v37 = vpop.f32.mrf.mxu0 }
 0x2b4   :  { %v1235_v38 = vpop.f32.mrf.mxu0 }
 0x2b5   :  { %v1236_v42 = vadd.f32 %v1235_v38, %v1234_v37 }
 0x2b6   :  { %v1237_v40 = vpop.f32.mrf.mxu0 }
 0x2b8   :  { %v1238_v41 = vpop.f32.mrf.mxu0 }
 0x2b9   :  { %v1239_v43 = vadd.f32 %v1238_v41, %v1237_v40 }
 0x2bb   :  { %v953_v45 = vpack.c.bf16 %v1239_v43, %v1236_v42 }
 0x2bd   :  { %v963_v46 = vadd.bf16 %v962_v44, %v953_v45 }
 0x2bf   :  { %v964_v47 = vmul.bf16 1009007652, %v963_v46 }
 0x2c1   :  { %v965_v48 = vmax.bf16 %v964_v47, %v963_v46 }
 0x2c3   :  { %1266 = vmatmul.mubr.bf16.vlgmr.msra.gmra.mxu1 %v965_v48 }
 0x383   :  { %v1069_v49 = vpop.f32.mrf.mxu1 }
 0x384   :  { %v1070_v53 = vadd.f32 %v1200_v50, %v1069_v49 }
 0x385   :  { %v1267_v51 = vpop.f32.mrf.mxu1 }
 0x387   :  { %v1072_v52 = vpop.f32.mrf.mxu1 }
 0x388   :  { %v1073_v54 = vadd.f32 %v1200_v50, %v1072_v52 }
 0x389   :  { %v1268_v55 = vpop.f32.mrf.mxu1 }
 0x38a   :  { %v1216_v56 = vpack.c.bf16 %v1073_v54, %v1070_v53 }
 0x38c   :  { %1217 = vst [vmem:[#allocation11] sm:$0xff] %v1216_v56  }
 0x38d   :  { %1532 = shalt.err (!%p1529_p1)
}
 0x38e   :  { %1097 = dma.vmem_to_hbm [thread:$0]  %s1092_s30, 128, %s1644_s6, [#allocation4], %s1554_s9, %s1554_s9, %s1555_s10  }
 0x38f   :  { %1547 = dma.done.wait [#allocation4], 128  }
 0x390   :  { %1548 = vsyncadd [#allocation4], 4294967168 }
 0x391   :  { %1101 = vsyncpa [#allocation3], 1 }
 0x392   :  { %1102 = vsyncpa [#allocation6], 1 }
 0x393   :  { %1103 = vsyncpa [#allocation9], 1 }
 0x394   :  { %1104 = vsyncpa [#allocation4], 1 }

</bundles_post_ra>
